<compile_context>
chip_gen: v5e
topology: v5e:2x2
jax: 0.10.0
libtpu: 0.0.40
codegen_flags: <defaults>
</compile_context>

<pallas_src>
import math
from functools import partial

import jax
import jax.numpy as jnp
from jax.experimental import pallas as pl
from jax.experimental.pallas import tpu as pltpu

EPS = 1e-6


def _round_up(x, m):
    return ((x + m - 1) // m) * m


def _cdiv(a, b):
    return -(-a // b)


def _int_pow(x, n):
    """x ** n for a small positive integer n via square-and-multiply (VPU only)."""
    result = None
    base = x
    while n > 0:
        if n & 1:
            result = base if result is None else result * base
        n >>= 1
        if n:
            base = base * base
    return result


def _gem_kernel(p_ref, x_ref, o_ref, acc_ref, *, n_valid, tn, mask_n, p_static):
    # p_ref   : SMEM (1,) f32                       -- learnable GeM exponent
    # x_ref   : VMEM (TB, TN, TC) input tile (ragged edges hold garbage)
    # o_ref   : VMEM (TB, TC) output tile (resident across the N-chunk axis)
    # acc_ref : VMEM (TB, 8 or 1, TC) f32 partial-sum accumulator
    k = pl.program_id(2)
    nk = pl.num_programs(2)

    @pl.when(k == 0)
    def _():
        acc_ref[...] = jnp.zeros_like(acc_ref)

    x = x_ref[...].astype(jnp.float32)
    x = jnp.maximum(x, EPS)                         # clamp(min=eps) -> strictly > 0

    if p_static is None:
        xp = jnp.exp(p_ref[0] * jnp.log(x))         # x ** p with traced exponent (EUP)
    else:
        pv = float(p_static)
        pi = int(round(pv))
        if abs(pv - pi) < 1e-12 and 1 <= pi <= 16:
            xp = _int_pow(x, pi)                    # integer p: pure VPU, EUP stays free
        else:
            xp = jnp.exp(jnp.float32(pv) * jnp.log(x))

    def _accum(vals):
        tb, tnv, tc = vals.shape
        if acc_ref.shape[1] == 8:
            # Add whole vregs only; defer the cross-sublane (8-row) reduce to finalize.
            acc_ref[...] += vals.reshape(tb, tnv // 8, 8, tc).sum(axis=1)
        else:
            acc_ref[...] += vals.sum(axis=1, keepdims=True)

    if mask_n:
        # Only the last N chunk contains ragged (garbage) rows -> gate the mask.
        @pl.when(k != nk - 1)
        def _():
            _accum(xp)

        @pl.when(k == nk - 1)
        def _():
            row = k * tn + jax.lax.broadcasted_iota(jnp.int32, xp.shape, 1)
            _accum(jnp.where(row < n_valid, xp, 0.0))
    else:
        _accum(xp)

    @pl.when(k == nk - 1)
    def _():
        s = jnp.sum(acc_ref[...], axis=1)           # single cross-sublane reduce (XLU)
        if p_static is None:
            inv_p = 1.0 / p_ref[0]
        else:
            inv_p = jnp.float32(1.0 / float(p_static))
        log_n = jnp.float32(math.log(n_valid))
        # (sum / N) ** (1/p) == exp((log(sum) - log(N)) * (1/p)): one log + one exp.
        # Note: if every valid value was clamped to EPS and p is very large, sum can
        # underflow to 0 -> output 0, matching the f32 reference behaviour.
        o_ref[...] = jnp.exp((jnp.log(s) - log_n) * inv_p).astype(o_ref.dtype)


def gem_pool(x, p=None, *, p_static=None, tn_override=None):
    """GeM pooling.  x: [B, N, C].  Returns [B, C].

    p        : learnable exponent (scalar / shape-(1,) array); traced (training path).
    p_static : optional Python float -- inference-time specialization when the
               parameter value is known/frozen (avoids per-element log+exp for
               integer p). Semantics are identical to the traced path.
    """
    B, N, C = x.shape
    if p is None:
        if p_static is None:
            raise ValueError("gem_pool needs `p` or `p_static`")
        p_arr = jnp.full((1,), float(p_static), jnp.float32)
    else:
        p_arr = jnp.asarray(p, jnp.float32).reshape((1,))

    x_item = jnp.dtype(x.dtype).itemsize
    sub_in = {4: 8, 2: 16, 1: 32}.get(x_item, 8)    # dtype-aware sublane packing

    # ---- batch tile: whole batch when small (block == full dim is always legal),
    #      else 32 rows (multiple of 8/16/32 -> dense for every dtype packing).
    TB = B if B <= 32 else 32

    # ---- channel tile: one full-C tile when it fits; else 128-multiples that
    #      preferably divide round_up(C, 128) (waste <= 127 lanes of compute).
    C_cap = 2048
    if C <= C_cap:
        TC = C
    else:
        TC = C_cap
        c128 = _round_up(C, 128)
        for t in range(C_cap, 127, -128):
            if c128 % t == 0:
                TC = t
                break
    # v7x has 2 TensorCores: make sure the parallel (B, C) grid has >= 2 points
    # when that is cheap to arrange, so small-batch workloads use both cores.
    if _cdiv(B, TB) * _cdiv(C, TC) < 2 and C >= 256:
        TC = min(TC, _round_up(_cdiv(C, 2), 128))

    # ---- N tile: keep the two double-buffered input tiles <= ~12 MiB (fits the
    #      scoped-VMEM budget on every generation incl. v7x); prefer a TN that
    #      divides N so no masking is needed at all.
    in_budget = 12 * 1024 * 1024
    tn_cap = max(sub_in, (in_budget // (2 * TB * TC * x_item)) // sub_in * sub_in)
    if N <= tn_cap:
        TN = N
    else:
        TN = tn_cap
        for t in range(tn_cap, max(sub_in, tn_cap // 2) - 1, -sub_in):
            if N % t == 0:
                TN = t
                break
    if tn_override is not None:                     # for testing the multi-chunk path
        TN = max(1, min(N, int(tn_override)))

    mask_n = (N % TN) != 0
    acc_rows = 8 if TN % 8 == 0 else 1              # deferred-sublane accumulator rows
    grid = (_cdiv(B, TB), _cdiv(C, TC), _cdiv(N, TN))

    out_item = jnp.dtype(x.dtype).itemsize
    need = (2 * TB * TN * TC * x_item               # double-buffered input tiles
            + 2 * TB * TC * out_item                # double-buffered output tiles
            + TB * acc_rows * TC * 4)               # f32 accumulator scratch
    vmem_limit = int(min(max(int(need * 1.25) + (2 << 20), 8 << 20), 30 << 20))

    kernel = partial(_gem_kernel, n_valid=N, tn=TN, mask_n=mask_n,
                     p_static=(float(p_static) if p_static is not None else None))

    out = pl.pallas_call(
        kernel,
        out_shape=jax.ShapeDtypeStruct((B, C), x.dtype),
        grid=grid,
        in_specs=[
            pl.BlockSpec(memory_space=pltpu.SMEM),                   # p (whole array)
            pl.BlockSpec((TB, TN, TC), lambda b, c, k: (b, k, c)),   # x tile
        ],
        out_specs=pl.BlockSpec((TB, TC), lambda b, c, k: (b, c)),
        scratch_shapes=[pltpu.VMEM((TB, acc_rows, TC), jnp.float32)],
        compiler_params=pltpu.CompilerParams(
            dimension_semantics=("parallel", "parallel", "arbitrary"),
            vmem_limit_bytes=vmem_limit,
        ),
    )(p_arr, x)
    return out


def gem_pool_ref(x, p):
    """Pure-JAX reference matching the PyTorch forward (kept as [B, C])."""
    p = jnp.asarray(p, jnp.float32).reshape(())
    t = jnp.clip(x.astype(jnp.float32), EPS, None) ** p
    t = jnp.mean(t, axis=1)
    return (t ** (1.0 / p)).astype(x.dtype)


if __name__ == "__main__":
    key = jax.random.PRNGKey(0)

    # nn.Parameter(torch.ones(1) * 3)
    p_param = jnp.ones((1,), jnp.float32) * 3.0

    # Test 1: small spec-like shape (B=2, N=8, C=32), traced-p SMEM path,
    #         single N chunk, no padding anywhere.
    B, N, C = 2, 8, 32
    x1 = jax.random.normal(key, (B, N, C), dtype=jnp.float32)
    out1 = jax.block_until_ready(gem_pool(x1, p_param))
    ref1 = gem_pool_ref(x1, p_param)
    assert out1.shape == (B, C), out1.shape
    assert jnp.allclose(out1, ref1, rtol=1e-4, atol=1e-5), (
        f"max err {jnp.max(jnp.abs(out1 - ref1))}")

    # Test 2: multi-chunk N reduction (3 chunks) with a ragged last chunk
    #         (gated mask) and ragged-C handling; static integer p (VPU pow path).
    B2, N2, C2 = 3, 40, 160
    x2 = jax.random.normal(jax.random.PRNGKey(1), (B2, N2, C2), dtype=jnp.float32)
    out2 = jax.block_until_ready(gem_pool(x2, p_param, p_static=3.0, tn_override=16))
    ref2 = gem_pool_ref(x2, p_param)
    assert out2.shape == (B2, C2), out2.shape
    assert jnp.allclose(out2, ref2, rtol=1e-4, atol=1e-5), (
        f"max err {jnp.max(jnp.abs(out2 - ref2))}")

    # Test 3: C-split heuristic for dual-TensorCore (grid (1,2,1)),
    #         static non-integer p, deferred sublane accumulate.
    B3, N3, C3 = 2, 64, 512
    p3 = 2.5
    x3 = jax.random.normal(jax.random.PRNGKey(2), (B3, N3, C3), dtype=jnp.float32)
    out3 = jax.block_until_ready(gem_pool(x3, p_static=p3))
    ref3 = gem_pool_ref(x3, jnp.float32(p3))
    assert out3.shape == (B3, C3), out3.shape
    assert jnp.allclose(out3, ref3, rtol=1e-4, atol=1e-5), (
        f"max err {jnp.max(jnp.abs(out3 - ref3))}")

    print("KERNEL_OK")
</pallas_src>

<mosaic_0001>
module attributes {stable_mosaic.version = 11 : i64} {
  func.func @_gem_kernel(%arg0: i32, %arg1: i32, %arg2: i32, %arg3: memref<1xf32, #tpu.memory_space<smem>>, %arg4: memref<2x8x32xf32, #tpu.memory_space<vmem>>, %arg5: memref<2x32xf32, #tpu.memory_space<vmem>>, %arg6: memref<2x8x32xf32, #tpu.memory_space<vmem>>) attributes {dimension_semantics = [#tpu.dimension_semantics<parallel>, #tpu.dimension_semantics<parallel>, #tpu.dimension_semantics<arbitrary>], iteration_bounds = array<i64: 1, 1, 1>, scalar_prefetch = 0 : i64, scratch_operands = 1 : i64, tpu.core_type = #tpu.core_type<tc>, window_params = [{transform_indices = @transform_0, window_bounds = array<i64: 1>}, {transform_indices = @transform_1, window_bounds = array<i64: 2, 8, 32>}, {transform_indices = @transform_2, window_bounds = array<i64: 2, 32>}]} {
    %c0_i32 = arith.constant 0 : i32
    %0 = arith.cmpi eq, %arg2, %c0_i32 : i32
    %1 = arith.extui %0 : i1 to i32
    %c0_i32_0 = arith.constant 0 : i32
    %2 = arith.cmpi ne, %1, %c0_i32_0 : i32
    scf.if %2 {
      %cst_13 = arith.constant 0.000000e+00 : f32
      %19 = vector.broadcast %cst_13 : f32 to vector<2x8x32xf32>
      %c0_14 = arith.constant 0 : index
      %c0_15 = arith.constant 0 : index
      %c0_16 = arith.constant 0 : index
      %20 = vector.load %arg6[%c0_14, %c0_15, %c0_16] : memref<2x8x32xf32, #tpu.memory_space<vmem>>, vector<2x8x32xf32>
      tpu.vector_store %arg6[%c0_14, %c0_15, %c0_16], %19 {strides = array<i32>} : memref<2x8x32xf32, #tpu.memory_space<vmem>>, vector<2x8x32xf32>,
    } else {
    }
    %c0 = arith.constant 0 : index
    %c0_1 = arith.constant 0 : index
    %c0_2 = arith.constant 0 : index
    %3 = vector.load %arg4[%c0, %c0_1, %c0_2] : memref<2x8x32xf32, #tpu.memory_space<vmem>>, vector<2x8x32xf32>
    %cst = arith.constant 9.99999997E-7 : f32
    %4 = vector.broadcast %cst : f32 to vector<2x8x32xf32>
    %5 = arith.maximumf %3, %4 : vector<2x8x32xf32>
    %c0_3 = arith.constant 0 : index
    %6 = memref.load %arg3[%c0_3] : memref<1xf32, #tpu.memory_space<smem>>
    %7 = math.log %5 : vector<2x8x32xf32>
    %8 = vector.broadcast %6 : f32 to vector<2x8x32xf32>
    %9 = arith.mulf %8, %7 : vector<2x8x32xf32>
    %10 = math.exp %9 : vector<2x8x32xf32>
    %c0_4 = arith.constant 0 : index
    %c0_5 = arith.constant 0 : index
    %c0_6 = arith.constant 0 : index
    %11 = vector.load %arg6[%c0_4, %c0_5, %c0_6] : memref<2x8x32xf32, #tpu.memory_space<vmem>>, vector<2x8x32xf32>
    %12 = vector.shape_cast %10 : vector<2x8x32xf32> to vector<2x1x8x32xf32>
    %cst_7 = arith.constant dense<0.000000e+00> : vector<2x8x32xf32>
    %13 = vector.multi_reduction <add>, %12, %cst_7 [1] : vector<2x1x8x32xf32> to vector<2x8x32xf32>
    %14 = arith.addf %11, %13 : vector<2x8x32xf32>
    %c0_8 = arith.constant 0 : index
    %c0_9 = arith.constant 0 : index
    %c0_10 = arith.constant 0 : index
    %15 = vector.load %arg6[%c0_8, %c0_9, %c0_10] : memref<2x8x32xf32, #tpu.memory_space<vmem>>, vector<2x8x32xf32>
    tpu.vector_store %arg6[%c0_8, %c0_9, %c0_10], %14 {strides = array<i32>} : memref<2x8x32xf32, #tpu.memory_space<vmem>>, vector<2x8x32xf32>,
    %c0_i32_11 = arith.constant 0 : i32
    %16 = arith.cmpi eq, %arg2, %c0_i32_11 : i32
    %17 = arith.extui %16 : i1 to i32
    %c0_i32_12 = arith.constant 0 : i32
    %18 = arith.cmpi ne, %17, %c0_i32_12 : i32
    scf.if %18 {
      %c0_13 = arith.constant 0 : index
      %c0_14 = arith.constant 0 : index
      %c0_15 = arith.constant 0 : index
      %19 = vector.load %arg6[%c0_13, %c0_14, %c0_15] : memref<2x8x32xf32, #tpu.memory_space<vmem>>, vector<2x8x32xf32>
      %cst_16 = arith.constant dense<0.000000e+00> : vector<2x32xf32>
      %20 = vector.multi_reduction <add>, %19, %cst_16 [1] : vector<2x8x32xf32> to vector<2x32xf32>
      %c0_17 = arith.constant 0 : index
      %21 = memref.load %arg3[%c0_17] : memref<1xf32, #tpu.memory_space<smem>>
      %cst_18 = arith.constant 1.000000e+00 : f32
      %22 = arith.divf %cst_18, %21 : f32
      %23 = math.log %20 : vector<2x32xf32>
      %cst_19 = arith.constant 2.07944155 : f32
      %24 = vector.broadcast %cst_19 : f32 to vector<2x32xf32>
      %25 = arith.subf %23, %24 : vector<2x32xf32>
      %26 = vector.broadcast %22 : f32 to vector<2x32xf32>
      %27 = arith.mulf %25, %26 : vector<2x32xf32>
      %28 = math.exp %27 : vector<2x32xf32>
      %c0_20 = arith.constant 0 : index
      %c0_21 = arith.constant 0 : index
      %29 = vector.load %arg5[%c0_20, %c0_21] : memref<2x32xf32, #tpu.memory_space<vmem>>, vector<2x32xf32>
      tpu.vector_store %arg5[%c0_20, %c0_21], %28 {strides = array<i32>} : memref<2x32xf32, #tpu.memory_space<vmem>>, vector<2x32xf32>,
    } else {
    }
    return
  }
  func.func @transform_0(%arg0: i32, %arg1: i32, %arg2: i32) -> i32 {
    %c0_i32 = arith.constant 0 : i32
    %c0_i32_0 = arith.constant 0 : i32
    return %c0_i32 : i32
  }
  func.func @transform_1(%arg0: i32, %arg1: i32, %arg2: i32) -> (i32, i32, i32) {
    %c0_i32 = arith.constant 0 : i32
    return %arg0, %arg2, %arg1 : i32, i32, i32
  }
  func.func @transform_2(%arg0: i32, %arg1: i32, %arg2: i32) -> (i32, i32) {
    %c0_i32 = arith.constant 0 : i32
    return %arg0, %arg1 : i32, i32
  }
}

</mosaic_0001>

<bundles_post_ra>
// kernel: tpu_custom_call.1
= control target key start
LH: loop header
LB: loop body
LE: loop exit
PB: predicated region body
PF: predicated region fallthrough
CT: control target
= control target key end

     0   :  { %8 = vsyncpa [#allocation5], 0  ;;  %s248_s0 = inlined_call_operand.<no memory space> [shape: f32[1], index: 0, kind: input, shape index: {}]   ;;  %s249_s1 = inlined_call_operand.hbm [shape: f32[2,8,32], index: 1, kind: input, shape index: {}]   ;;  %s250_s2 = inlined_call_operand.hbm [shape: f32[2,32], index: 2, kind: output, shape index: {}]  }
   0x1   :  { %9 = vsyncpa [#allocation6], 0  ;;  %s16_s11 = sshll.u32 %s249_s1, 4  ;;  %s213_s12 = smov [#allocation4]   ;;  %s17_s11 = int_to_ptr.hbm [resolvable:$true] %s16_s11 }
   0x2   :  { %s18_s13 = sshll.u32 %s213_s12, 4  ;;  %s214_s14 = smov 128   ;;  %s19_s13 = int_to_ptr.vmem [resolvable:$true] %s18_s13 }
   0x3   :  { %s215_s15 = smov 8  }
   0x4   :  { %24 = dma.hbm_to_vmem [thread:$0]  %s17_s11, 256, %s19_s13, [#allocation5], %s214_s14, %s214_s14, %s215_s15  }
   0x5   :  { %209 = dma.done.wait [#allocation5], 256  }
   0x6   :  { %210 = vsyncadd [#allocation5], 4294967040  ;;  %v45_v0 = vstv %s248_s0  ;;  %vm33_vm0 = vcmask 261120   ;;  %v216_v1 = vmov 0.0   ;;  %v36_v3 = vld [vmem:[#allocation4] sm:$0xff]  ;;  %v37_v4 = vld [vmem:[#allocation4 + $0x8] sm:$0xff] }
   0x7   :  { %143 = vrcp.f32 %v45_v0  ;;  %34 = vst.msk [vmem:[#allocation2] sm:$0xff] %vm33_vm0, %v216_v1  ;;  %v38_v5 = vmax.f32 %v36_v3, 1e-06  ;;  %v39_v6 = vmax.f32 %v37_v4, 1e-06  ;;  %vm87_vm1 = vweird.f32 %v45_v0  ;;  %s217_s1 = smov [#allocation7]  }
   0x8   :  { %35 = vst.msk [vmem:[#allocation2 + $0x8] sm:$0xff] %vm33_vm0, %v216_v1  ;;  %v93_v8 = vand.u32 2147483648, %v45_v0  ;;  %v91_v10 = vand.u32 2147483647, %v45_v0  ;;  %s122_s18 = sshll.u32 %s217_s1, 4  ;;  %s124_s21 = sshll.u32 %s250_s2, 4  ;;  %s123_s18 = int_to_ptr.vmem [resolvable:$true] %s122_s18  ;;  %s125_s21 = int_to_ptr.hbm [resolvable:$true] %s124_s21 }
   0x9   :  { %145 = vlog2.f32 %v38_v5  ;;  %vm112_vm5 = vcmask 1041409   ;;  %vm115_vm6 = vcmask 254976  }
   0xa   :  { %147 = vlog2.f32 %v39_v6  ;;  %v94_v12 = vor.u32 1.1754944e-38, %v93_v8  ;;  %vm92_vm4 = vcmp.eq.f32.partialorder %v91_v10, 8.507059e+37 }
   0xd   :  { %v144_v2 = vpop.eup %143 }
   0xe   :  { %v83_v7 = vmul.f32 %v144_v2, %v45_v0  ;;  %vm88_vm2 = vweird.f32 %v144_v2  ;;  %v52_v24 = vld [vmem:[#allocation2] sm:$0xff] }
   0xf   :  { %vm89_vm3 = vmor %vm87_vm1, %vm88_vm2  ;;  %v146_v14 = vpop.eup %145  ;;  %v53_v25 = vld [vmem:[#allocation2 + $0x8] sm:$0xff] }
  0x10   :  { %v84_v9 = vsub.f32 1.0, %v83_v7  ;;  %v148_v16 = vpop.eup %147  ;;  %v42_v17 = vmul.f32 0.6931472, %v146_v14 }
  0x11   :  { %v44_v19 = vmul.f32 0.6931472, %v148_v16 }
  0x12   :  { %v85_v11 = vmul.f32 %v144_v2, %v84_v9  ;;  %v46_v20 = vmul.f32 %v45_v0, %v42_v17 }
  0x13   :  { %v47_v21 = vmul.f32 %v45_v0, %v44_v19 }
  0x14   :  { %v86_v13 = vadd.f32 %v144_v2, %v85_v11  ;;  %v48_v22 = vmul.f32 1.442695, %v46_v20 }
  0x15   :  { %v50_v23 = vmul.f32 1.442695, %v47_v21 }
  0x16   :  { %v90_v15 = vsel %vm89_vm3, %v144_v2, %v86_v13  ;;  %149 = vpow2.f32 %v48_v22 }
  0x17   :  { %v95_v18 = vsel %vm92_vm4, %v94_v12, %v90_v15  ;;  %151 = vpow2.f32 %v50_v23 }
  0x18   :  { %136 = vpush %v95_v18 }
  0x1c   :  { %v150_v26 = vpop.eup %149 }
  0x1d   :  { %v152_v27 = vpop.eup %151  ;;  %v56_v28 = vadd.f32 %v150_v26, %v52_v24 }
  0x1e   :  { %v57_v29 = vadd.f32 %v152_v27, %v53_v25 }
  0x1f   :  { %59 = vst.msk [vmem:[#allocation2] sm:$0xff] %vm33_vm0, %v56_v28 }
  0x20   :  { %60 = vst.msk [vmem:[#allocation2 + $0x8] sm:$0xff] %vm33_vm0, %v57_v29 }
  0x26   :  { %v64_v30 = vld [vmem:[#allocation2] sm:$0xff] }
  0x27   :  { %v65_v31 = vld [vmem:[#allocation2 + $0x8] sm:$0xff]  ;;  %v66_v32 = vsel %vm33_vm0, %v64_v30, 0.0 }
  0x28   :  { %v67_v33 = vrot.slane %v66_v32, 4  ;;  %v73_v34 = vsel %vm33_vm0, %v65_v31, 0.0 }
  0x29   :  { %v74_v35 = vrot.slane %v73_v34, 4 }
  0x2a   :  { %v68_v36 = vadd.f32 %v67_v33, %v66_v32 }
  0x2b   :  { %v75_v37 = vadd.f32 %v74_v35, %v73_v34 }
  0x2c   :  { %v69_v38 = vrot.slane %v68_v36, 2 }
  0x2d   :  { %v76_v39 = vrot.slane %v75_v37, 2 }
  0x2e   :  { %v70_v40 = vadd.f32 %v69_v38, %v68_v36 }
  0x2f   :  { %v77_v41 = vadd.f32 %v76_v39, %v75_v37 }
  0x30   :  { %v71_v42 = vrot.slane %v70_v40, 1 }
  0x31   :  { %v78_v43 = vrot.slane %v77_v41, 1 }
  0x32   :  { %v72_v44 = vadd.f32 %v71_v42, %v70_v40 }
  0x33   :  { %v79_v45 = vadd.f32 %v78_v43, %v77_v41 }
  0x34   :  { %153 = vlog2.f32 %v72_v44 }
  0x35   :  { %155 = vlog2.f32 %v79_v45 }
  0x3a   :  { %v154_v46 = vpop.eup %153 }
  0x3b   :  { %v156_v47 = vpop.eup %155  ;;  %v98_v48 = vmul.f32 0.6931472, %v154_v46 }
  0x3c   :  { %v100_v49 = vmul.f32 0.6931472, %v156_v47 }
  0x3d   :  { %v134_v50 = vadd.f32 -2.0794415, %v98_v48 }
  0x3e   :  { %v135_v51 = vadd.f32 -2.0794415, %v100_v49 }
  0x49   :  { %s137_s0 = spop %136 }
  0x4a   :  { %v103_v52 = vstv %s137_s0 }
  0x4b   :  { %v104_v53 = vmul.f32 %v134_v50, %v103_v52  ;;  %v105_v54 = vmul.f32 %v135_v51, %v103_v52 }
  0x4d   :  { %v106_v55 = vmul.f32 1.442695, %v104_v53  ;;  %v108_v56 = vmul.f32 1.442695, %v105_v54 }
  0x4f   :  { %157 = vpow2.f32 %v106_v55 }
  0x50   :  { %159 = vpow2.f32 %v108_v56 }
  0x55   :  { %v158_v57 = vpop.eup %157 }
  0x56   :  { %v160_v58 = vpop.eup %159 }
  0x57   :  { %v113_v59 = vsel %vm112_vm5, %v160_v58, %v158_v57 }
  0x58   :  { %116 = vst.msk [vmem:[#allocation7] sm:$0x3] %vm115_vm6, %v113_v59 }
  0x59   :  { %127 = dma.vmem_to_hbm [thread:$0]  %s123_s18, 32, %s125_s21, [#allocation6]  }
  0x5a   :  { %211 = dma.done.wait [#allocation6], 32  }
  0x5b   :  { %212 = vsyncadd [#allocation6], 4294967264 }
  0x5c   :  { %132 = vsyncpa [#allocation5], 1 }
  0x5d   :  { %133 = vsyncpa [#allocation6], 1 }

</bundles_post_ra>
